<compile_context>
chip_gen: v6e
topology: v6e:2x2x1
jax: 0.10.0
libtpu: 0.0.40
codegen_flags: <defaults>
</compile_context>

<pallas_src>
import functools

import jax
import jax.numpy as jnp
from jax.experimental import pallas as pl
from jax.experimental.pallas import tpu as pltpu

LN_EPS = 1e-12  # matches nn.LayerNorm(output_feat_size, eps=1e-12)
MAX_TILE_N = 1024  # rows per grid step (>=512 reaches ~85% of HBM roofline)


def _round_up(x, m):
    return ((x + m - 1) // m) * m


# ---- Pallas kernel: fused Linear + bias + LayerNorm for one row tile --------
def _feature_resizer_kernel(x_ref, wt_ref, b_ref, g_ref, beta_ref, out_ref, *, do_ln):
    # MXU matmul in native dtype, f32 accumulation.
    y = jnp.dot(x_ref[...], wt_ref[...], preferred_element_type=jnp.float32)
    y = y + b_ref[...]                                       # bias in f32
    if do_ln:
        mu = jnp.mean(y, axis=-1, keepdims=True)
        d = y - mu                                           # reuse (y - mu)
        var = jnp.mean(d * d, axis=-1, keepdims=True)
        y = d * jax.lax.rsqrt(var + LN_EPS) * g_ref[...] + beta_ref[...]
    # TODO(synk): nn.Dropout is identity in eval mode; training-mode dropout not implemented.
    out_ref[...] = y.astype(out_ref.dtype)


# ---- wrapper ----------------------------------------------------------------
def feature_resizer(x, weight_t, bias, ln_gamma, ln_beta, *, do_ln=True):
    """FeatureResizer.forward (eval mode).

    x:         (..., C1)  input embeddings (f32 or bf16)
    weight_t:  (C1, C2)   pre-transposed nn.Linear weight (transpose once at load time)
    bias, ln_gamma, ln_beta: (C2,)
    returns:   (..., C2)  same dtype as x
    """
    C1, C2 = weight_t.shape
    lead = x.shape[:-1]
    n = 1
    for d in lead:
        n *= d
    x2d = x.reshape(n, C1)

    # Row-tile sizing: second-to-last block dim must be a multiple of the
    # sublane count (8 for f32, 16 for packed bf16). Pad N up to a multiple of
    # the tile so every grid step sees a full block.
    sub = 8 if x.dtype == jnp.dtype(jnp.float32) else 16
    tile_n = min(MAX_TILE_N, _round_up(n, sub))
    n_padded = _round_up(n, tile_n)
    if n_padded != n:
        x2d = jnp.pad(x2d, ((0, n_padded - n), (0, 0)))

    # Params: weight in x's dtype (bf16 MXU rate for bf16 inputs); bias / LN
    # params in f32 for the f32 LayerNorm math.
    wt = weight_t.astype(x.dtype)
    b = bias.reshape(1, C2).astype(jnp.float32)
    g = ln_gamma.reshape(1, C2).astype(jnp.float32)
    be = ln_beta.reshape(1, C2).astype(jnp.float32)

    kernel = functools.partial(_feature_resizer_kernel, do_ln=do_ln)
    itemsize = jnp.dtype(x.dtype).itemsize
    cost = pl.CostEstimate(
        flops=2 * n * C1 * C2,
        transcendentals=0,
        bytes_accessed=(n * C1 + C1 * C2 + n * C2) * itemsize + 3 * C2 * 4,
    )

    out = pl.pallas_call(
        kernel,
        out_shape=jax.ShapeDtypeStruct((n_padded, C2), x.dtype),
        grid=(n_padded // tile_n,),
        in_specs=[
            pl.BlockSpec((tile_n, C1), lambda i: (i, 0)),    # row tile of x
            pl.BlockSpec((C1, C2), lambda i: (0, 0)),        # weight: resident
            pl.BlockSpec((1, C2), lambda i: (0, 0)),         # bias: resident
            pl.BlockSpec((1, C2), lambda i: (0, 0)),         # gamma: resident
            pl.BlockSpec((1, C2), lambda i: (0, 0)),         # beta: resident
        ],
        out_specs=pl.BlockSpec((tile_n, C2), lambda i: (i, 0)),
        compiler_params=pltpu.CompilerParams(
            dimension_semantics=("parallel",),               # shard rows across TCs (v7x)
        ),
        cost_estimate=cost,
    )(x2d, wt, b, g, be)

    if n_padded != n:
        out = out[:n]
    return out.reshape(*lead, C2)


# ---- pure-JAX reference (for correctness check) ------------------------------
def _ref_feature_resizer(x, weight, bias, ln_gamma, ln_beta, do_ln=True):
    y = x.astype(jnp.float32) @ weight.T.astype(jnp.float32) + bias
    if do_ln:
        mu = jnp.mean(y, axis=-1, keepdims=True)
        var = jnp.mean((y - mu) ** 2, axis=-1, keepdims=True)
        y = (y - mu) * jax.lax.rsqrt(var + LN_EPS) * ln_gamma + ln_beta
    return y


if __name__ == "__main__":
    key = jax.random.PRNGKey(0)
    kx, kw, kb, kg, kbe, kx2 = jax.random.split(key, 6)

    # Small shapes consistent with the module: (B, L) token embeddings resized
    # C1 -> C2.  C2 multiple of 128 -> lane-dense stores.
    B, L, C1, C2 = 2, 8, 64, 128
    x = jax.random.normal(kx, (B, L, C1), jnp.float32)
    weight = (0.05 * jax.random.normal(kw, (C2, C1))).astype(jnp.float32)
    bias = (0.02 * jax.random.normal(kb, (C2,))).astype(jnp.float32)
    gamma = (1.0 + 0.05 * jax.random.normal(kg, (C2,))).astype(jnp.float32)
    beta = (0.02 * jax.random.normal(kbe, (C2,))).astype(jnp.float32)

    # Pre-transpose the weight once (outside the per-call path).
    weight_t = jnp.transpose(weight)                          # (C1, C2)

    # --- do_ln=True path (configuration used in the model) ---
    out = feature_resizer(x, weight_t, bias, gamma, beta, do_ln=True)
    out = jax.block_until_ready(out)
    ref = _ref_feature_resizer(x, weight, bias, gamma, beta, do_ln=True)
    assert out.shape == (B, L, C2)
    assert jnp.allclose(out, ref, atol=1e-4, rtol=1e-4), "mismatch (do_ln=True)"

    # --- do_ln=False path (plain linear resize) ---
    out_noln = feature_resizer(x, weight_t, bias, gamma, beta, do_ln=False)
    out_noln = jax.block_until_ready(out_noln)
    ref_noln = _ref_feature_resizer(x, weight, bias, gamma, beta, do_ln=False)
    assert jnp.allclose(out_noln, ref_noln, atol=1e-4, rtol=1e-4), "mismatch (do_ln=False)"

    # --- ragged N (exercises row padding + slice-back) ---
    Lr = 37                                                   # n = 74, not a multiple of 8
    xr = jax.random.normal(kx2, (B, Lr, C1), jnp.float32)
    out_r = feature_resizer(xr, weight_t, bias, gamma, beta, do_ln=True)
    out_r = jax.block_until_ready(out_r)
    ref_r = _ref_feature_resizer(xr, weight, bias, gamma, beta, do_ln=True)
    assert out_r.shape == (B, Lr, C2)
    assert jnp.allclose(out_r, ref_r, atol=1e-4, rtol=1e-4), "mismatch (ragged N)"

    # --- bf16 I/O path (HBM-bound op -> halve bytes moved) ---
    x_bf = x.astype(jnp.bfloat16)
    out_bf = feature_resizer(x_bf, weight_t, bias, gamma, beta, do_ln=True)
    out_bf = jax.block_until_ready(out_bf)
    assert out_bf.dtype == jnp.bfloat16
    assert jnp.allclose(out_bf.astype(jnp.float32), ref, atol=5e-2, rtol=5e-2), "mismatch (bf16)"

    print("KERNEL_OK")
</pallas_src>

<mosaic_0001>
module attributes {stable_mosaic.version = 11 : i64} {
  func.func @_feature_resizer_kernel(%arg0: i32, %arg1: memref<16x64xf32, #tpu.memory_space<vmem>>, %arg2: memref<64x128xf32, #tpu.memory_space<vmem>>, %arg3: memref<1x128xf32, #tpu.memory_space<vmem>>, %arg4: memref<1x128xf32, #tpu.memory_space<vmem>>, %arg5: memref<1x128xf32, #tpu.memory_space<vmem>>, %arg6: memref<16x128xf32, #tpu.memory_space<vmem>>) attributes {dimension_semantics = [#tpu.dimension_semantics<parallel>], iteration_bounds = array<i64: 1>, scalar_prefetch = 0 : i64, scratch_operands = 0 : i64, tpu.core_type = #tpu.core_type<tc>, window_params = [{transform_indices = @transform_0, window_bounds = array<i64: 16, 64>}, {pipeline_mode = #tpu.pipeline_mode<synchronous>, transform_indices = @transform_1, window_bounds = array<i64: 64, 128>}, {pipeline_mode = #tpu.pipeline_mode<synchronous>, transform_indices = @transform_2, window_bounds = array<i64: 1, 128>}, {pipeline_mode = #tpu.pipeline_mode<synchronous>, transform_indices = @transform_3, window_bounds = array<i64: 1, 128>}, {pipeline_mode = #tpu.pipeline_mode<synchronous>, transform_indices = @transform_4, window_bounds = array<i64: 1, 128>}, {transform_indices = @transform_5, window_bounds = array<i64: 16, 128>}]} {
    %c0 = arith.constant 0 : index
    %c0_0 = arith.constant 0 : index
    %0 = vector.load %arg1[%c0, %c0_0] : memref<16x64xf32, #tpu.memory_space<vmem>>, vector<16x64xf32>
    %c0_1 = arith.constant 0 : index
    %c0_2 = arith.constant 0 : index
    %1 = vector.load %arg2[%c0_1, %c0_2] : memref<64x128xf32, #tpu.memory_space<vmem>>, vector<64x128xf32>
    %cst = arith.constant dense<0.000000e+00> : vector<16x128xf32>
    %2 = tpu.matmul %0, %1, %cst {dimension_numbers = #tpu.dot_dimension_numbers<[1], [0], [0], [1], [0, 0, 1, 1], [], []>} : vector<16x64xf32>, vector<64x128xf32>, vector<16x128xf32> -> vector<16x128xf32>
    %c0_3 = arith.constant 0 : index
    %c0_4 = arith.constant 0 : index
    %3 = vector.load %arg3[%c0_3, %c0_4] : memref<1x128xf32, #tpu.memory_space<vmem>>, vector<1x128xf32>
    %4 = vector.broadcast %3 : vector<1x128xf32> to vector<16x128xf32>
    %5 = arith.addf %2, %4 : vector<16x128xf32>
    %cst_5 = arith.constant dense<0.000000e+00> : vector<16xf32>
    %6 = vector.multi_reduction <add>, %5, %cst_5 [1] : vector<16x128xf32> to vector<16xf32>
    %7 = vector.shape_cast %6 : vector<16xf32> to vector<16x1xf32>
    %cst_6 = arith.constant 1.280000e+02 : f32
    %8 = vector.broadcast %cst_6 : f32 to vector<16x1xf32>
    %9 = arith.divf %7, %8 : vector<16x1xf32>
    %10 = vector.broadcast %9 : vector<16x1xf32> to vector<16x128xf32>
    %11 = arith.subf %5, %10 : vector<16x128xf32>
    %12 = arith.mulf %11, %11 : vector<16x128xf32>
    %cst_7 = arith.constant dense<0.000000e+00> : vector<16xf32>
    %13 = vector.multi_reduction <add>, %12, %cst_7 [1] : vector<16x128xf32> to vector<16xf32>
    %14 = vector.shape_cast %13 : vector<16xf32> to vector<16x1xf32>
    %cst_8 = arith.constant 1.280000e+02 : f32
    %15 = vector.broadcast %cst_8 : f32 to vector<16x1xf32>
    %16 = arith.divf %14, %15 : vector<16x1xf32>
    %cst_9 = arith.constant 9.99999996E-13 : f32
    %17 = vector.broadcast %cst_9 : f32 to vector<16x1xf32>
    %18 = arith.addf %16, %17 : vector<16x1xf32>
    %19 = math.rsqrt %18 : vector<16x1xf32>
    %20 = vector.broadcast %19 : vector<16x1xf32> to vector<16x128xf32>
    %21 = arith.mulf %11, %20 : vector<16x128xf32>
    %c0_10 = arith.constant 0 : index
    %c0_11 = arith.constant 0 : index
    %22 = vector.load %arg4[%c0_10, %c0_11] : memref<1x128xf32, #tpu.memory_space<vmem>>, vector<1x128xf32>
    %23 = vector.broadcast %22 : vector<1x128xf32> to vector<16x128xf32>
    %24 = arith.mulf %21, %23 : vector<16x128xf32>
    %c0_12 = arith.constant 0 : index
    %c0_13 = arith.constant 0 : index
    %25 = vector.load %arg5[%c0_12, %c0_13] : memref<1x128xf32, #tpu.memory_space<vmem>>, vector<1x128xf32>
    %26 = vector.broadcast %25 : vector<1x128xf32> to vector<16x128xf32>
    %27 = arith.addf %24, %26 : vector<16x128xf32>
    %c0_14 = arith.constant 0 : index
    %c0_15 = arith.constant 0 : index
    %28 = vector.load %arg6[%c0_14, %c0_15] : memref<16x128xf32, #tpu.memory_space<vmem>>, vector<16x128xf32>
    tpu.vector_store %arg6[%c0_14, %c0_15], %27 {strides = array<i32>} : memref<16x128xf32, #tpu.memory_space<vmem>>, vector<16x128xf32>,
    return
  }
  func.func @transform_0(%arg0: i32) -> (i32, i32) {
    %c0_i32 = arith.constant 0 : i32
    %c0_i32_0 = arith.constant 0 : i32
    return %arg0, %c0_i32 : i32, i32
  }
  func.func @transform_1(%arg0: i32) -> (i32, i32) {
    %c0_i32 = arith.constant 0 : i32
    %c0_i32_0 = arith.constant 0 : i32
    %c0_i32_1 = arith.constant 0 : i32
    return %c0_i32, %c0_i32_0 : i32, i32
  }
  func.func @transform_2(%arg0: i32) -> (i32, i32) {
    %c0_i32 = arith.constant 0 : i32
    %c0_i32_0 = arith.constant 0 : i32
    %c0_i32_1 = arith.constant 0 : i32
    return %c0_i32, %c0_i32_0 : i32, i32
  }
  func.func @transform_3(%arg0: i32) -> (i32, i32) {
    %c0_i32 = arith.constant 0 : i32
    %c0_i32_0 = arith.constant 0 : i32
    %c0_i32_1 = arith.constant 0 : i32
    return %c0_i32, %c0_i32_0 : i32, i32
  }
  func.func @transform_4(%arg0: i32) -> (i32, i32) {
    %c0_i32 = arith.constant 0 : i32
    %c0_i32_0 = arith.constant 0 : i32
    %c0_i32_1 = arith.constant 0 : i32
    return %c0_i32, %c0_i32_0 : i32, i32
  }
  func.func @transform_5(%arg0: i32) -> (i32, i32) {
    %c0_i32 = arith.constant 0 : i32
    %c0_i32_0 = arith.constant 0 : i32
    return %arg0, %c0_i32 : i32, i32
  }
}

</mosaic_0001>

<bundles_post_ra>
// kernel: tpu_custom_call.1
= control target key start
LH: loop header
LB: loop body
LE: loop exit
PB: predicated region body
PF: predicated region fallthrough
CT: control target
= control target key end

     0   :  { %10 = vsyncpa [#allocation3], 0  ;;  %s382_s0 = inlined_call_operand.hbm [shape: f32[16,64], index: 0, kind: input, shape index: {}]   ;;  %s383_s1 = inlined_call_operand.hbm [shape: f32[64,128], index: 1, kind: input, shape index: {}]   ;;  %s384_s2 = inlined_call_operand.vmem [shape: f32[1,128], index: 2, kind: input, shape index: {}]   ;;  %s385_s3 = inlined_call_operand.vmem [shape: f32[1,128], index: 3, kind: input, shape index: {}]   ;;  %s386_s4 = inlined_call_operand.vmem [shape: f32[1,128], index: 4, kind: input, shape index: {}]   ;;  %s387_s5 = inlined_call_operand.hbm [shape: f32[16,128], index: 5, kind: output, shape index: {}]  }
   0x1   :  { %11 = vsyncpa [#allocation6], 0 }
   0x2   :  { %12 = vsyncpa [#allocation4], 0  ;;  %s318_s18 = smov [#allocation2]  }
   0x3   :  { %s18_s19 = sshll.u32 %s318_s18, 4  ;;  %s19_s19 = int_to_ptr.vmem [resolvable:$true] %s18_s19 }
   0x4   :  { %s260_s20 = scalar_lea.vmem %s19_s19, 256  ;;  %p265_p1 = scmp.lt.s32.totalorder %s19_s19, %s19_s19 }
   0x5   :  { %p261_p0 = scmp.ne.s32.totalorder %s19_s19, %s260_s20  ;;  %p266_p2 = scmp.lt.s32.totalorder %s260_s20, %s260_s20 }
   0x7   :  { %p267_p3 = por %p266_p2, %p265_p1 }
   0x9   :  { %p268_p4 = pnand %p267_p3, %p261_p0 }
   0xb   :  { %271 = shalt.err (!%p268_p4)
}
   0xc   :  { %s319_s21 = smov 128   ;;  %s320_s22 = smov 8  }
   0xd   :  { %24 = dma.hbm_to_vmem [thread:$0]  %s382_s0, 256, %s19_s19, [#allocation3], %s319_s21, %s319_s21, %s320_s22  }
   0xe   :  { %s321_s25 = smov [#allocation5]  }
   0xf   :  { %s30_s26 = sshll.u32 %s321_s25, 4  ;;  %s31_s26 = int_to_ptr.vmem [resolvable:$true] %s30_s26 }
  0x10   :  { %s280_s27 = scalar_lea.vmem %s31_s26, 1024  ;;  %p285_p6 = scmp.lt.s32.totalorder %s31_s26, %s31_s26 }
  0x11   :  { %p281_p5 = scmp.ne.s32.totalorder %s31_s26, %s280_s27  ;;  %p286_p7 = scmp.lt.s32.totalorder %s280_s27, %s280_s27 }
  0x13   :  { %p287_p8 = por %p286_p7, %p285_p6 }
  0x15   :  { %p288_p9 = pnand %p287_p8, %p281_p5 }
  0x17   :  { %291 = shalt.err (!%p288_p9)
}
  0x18   :  { %36 = dma.hbm_to_vmem [thread:$0]  %s383_s1, 1024, %s31_s26, [#allocation6], %s319_s21, %s319_s21, %s320_s22  }
  0x19   :  { %312 = dma.done.wait [#allocation3], 256  }
  0x1a   :  { %313 = vsyncadd [#allocation3], 4294967040 }
  0x1b   :  { %314 = dma.done.wait [#allocation6], 1024  }
  0x1c   :  { %315 = vsyncadd [#allocation6], 4294966272  ;;  %v58_v0 = vld [vmem:[#allocation5 + $0x38] sm:$0xff]  ;;  %v57_v1 = vld [vmem:[#allocation5 + $0x30] sm:$0xff]  ;;  %vm66_vm0 = vcmask 523264   ;;  %s322_s8 = smov [#allocation7]  }
  0x1d   :  { %224 = vmatprep.subr.mxu0 %v58_v0  ;;  %v56_v2 = vld [vmem:[#allocation5 + $0x28] sm:$0xff]  ;;  %v49_v3 = vld [vmem:[#allocation2] sm:$0xff]  ;;  %v55_v4 = vld [vmem:[#allocation5 + $0x20] sm:$0xff]  ;;  %s196_s9 = sshll.u32 %s322_s8, 4  ;;  %s197_s9 = int_to_ptr.vmem [resolvable:$true] %s196_s9 }
  0x1e   :  { %225 = vmatpush3.msra.mxu0 %v58_v0  ;;  %240 = vmatprep.mubr.msk.f32.mxu0 %vm66_vm0, %v49_v3  ;;  %v54_v5 = vld [vmem:[#allocation5 + $0x18] sm:$0xff]  ;;  %v53_v6 = vld [vmem:[#allocation5 + $0x10] sm:$0xff]  ;;  %v52_v7 = vld [vmem:[#allocation5 + $0x8] sm:$0xff]  ;;  %s292_s10 = scalar_lea.vmem %s197_s9, 256  ;;  %p297_p11 = scmp.lt.s32.totalorder %s197_s9, %s197_s9 }
  0x1f   :  { %226 = vmatprep.subr.mxu0 %v57_v1  ;;  %v51_v8 = vld [vmem:[#allocation5] sm:$0xff]  ;;  %v50_v9 = vld [vmem:[#allocation2 + $0x8] sm:$0xff]  ;;  %v209_v11 = vld [vmem:[%s384_s2] ss:$0 sm:$0xff]  ;;  %p293_p10 = scmp.ne.s32.totalorder %s197_s9, %s292_s10  ;;  %p298_p12 = scmp.lt.s32.totalorder %s292_s10, %s292_s10 }
  0x20   :  { %227 = vmatpush3.msra.mxu0 %v57_v1  ;;  %v212_v30 = vld [vmem:[%s385_s3] ss:$0 sm:$0xff] }
  0x21   :  { %228 = vmatprep.subr.mxu0 %v56_v2  ;;  %v213_v32 = vld [vmem:[%s386_s4] ss:$0 sm:$0xff]  ;;  %p299_p13 = por %p298_p12, %p297_p11 }
  0x22   :  { %229 = vmatpush3.msra.mxu0 %v56_v2 }
  0x23   :  { %230 = vmatprep.subr.mxu0 %v55_v4  ;;  %p300_p0 = pnand %p299_p13, %p293_p10 }
  0x24   :  { %231 = vmatpush3.msra.mxu0 %v55_v4 }
  0x25   :  { %232 = vmatprep.subr.mxu0 %v54_v5 }
  0x26   :  { %233 = vmatpush3.msra.mxu0 %v54_v5 }
  0x27   :  { %234 = vmatprep.subr.mxu0 %v53_v6 }
  0x28   :  { %235 = vmatpush3.msra.mxu0 %v53_v6 }
  0x29   :  { %236 = vmatprep.subr.mxu0 %v52_v7 }
  0x2a   :  { %237 = vmatpush3.msra.mxu0 %v52_v7 }
  0x2b   :  { %238 = vmatprep.subr.mxu0 %v51_v8 }
  0x2c   :  { %239 = vmatpush3.msra.mxu0 %v51_v8 }
  0x2d   :  { %241 = vmatmul.mubr.msk.f32.vlgmr.msra.gmra.mxu0 %vm66_vm0, %v50_v9 }
  0xed   :  { %v242_v10 = vpop.f32.mrf.mxu0 }
  0xee   :  { %v145_v14 = vadd.f32 %v242_v10, %v209_v11 }
  0xef   :  { %v139_v12 = vpop.f32.mrf.mxu0 }
  0xf0   :  { %v140_v13 = vadd.f32 %v209_v11, %v139_v12 }
  0xf2   :  { %148 = vadd.xlane.f32.xlu0 %v140_v13 }
  0xf6   :  { %150 = vadd.xlane.f32.xlu0 %v145_v14 }
 0x17b   :  { %v149_v15 = vpop.xlane.xlu0 %148 }
 0x17c   :  { %v153_v16 = vmul.f32 0.0078125, %v149_v15 }
 0x17e   :  { %v155_v17 = vsub.f32 %v140_v13, %v153_v16 }
 0x17f   :  { %v151_v18 = vpop.xlane.xlu0 %150 }
 0x180   :  { %v154_v19 = vmul.f32 0.0078125, %v151_v18  ;;  %v157_v20 = vmul.f32 %v155_v17, %v155_v17 }
 0x182   :  { %v156_v21 = vsub.f32 %v145_v14, %v154_v19  ;;  %159 = vadd.xlane.f32.xlu1 %v157_v20 }
 0x184   :  { %v158_v22 = vmul.f32 %v156_v21, %v156_v21 }
 0x186   :  { %161 = vadd.xlane.f32.xlu1 %v158_v22 }
 0x20b   :  { %v160_v23 = vpop.xlane.xlu1 %159 }
 0x20c   :  { %v163_v24 = vmul.f32 0.0078125, %v160_v23 }
 0x20e   :  { %v165_v25 = vadd.f32 1e-12, %v163_v24 }
 0x20f   :  { %v162_v26 = vpop.xlane.xlu1 %161 }
 0x210   :  { %248 = vrsqrt.f32 %v165_v25  ;;  %v164_v27 = vmul.f32 0.0078125, %v162_v26 }
 0x212   :  { %v166_v28 = vadd.f32 1e-12, %v164_v27 }
 0x214   :  { %250 = vrsqrt.f32 %v166_v28 }
 0x21d   :  { %v249_v29 = vpop.eup %248 }
 0x21e   :  { %v169_v31 = vmul.f32 %v249_v29, %v155_v17 }
 0x220   :  { %v178_v33 = vmul.f32 %v212_v30, %v169_v31 }
 0x221   :  { %v251_v34 = vpop.eup %250 }
 0x222   :  { %v170_v35 = vmul.f32 %v251_v34, %v156_v21  ;;  %v187_v36 = vadd.f32 %v213_v32, %v178_v33 }
 0x224   :  { %v179_v37 = vmul.f32 %v212_v30, %v170_v35  ;;  %189 = vst [vmem:[#allocation7] sm:$0xff] %v187_v36 }
 0x226   :  { %v188_v38 = vadd.f32 %v213_v32, %v179_v37 }
 0x228   :  { %190 = vst [vmem:[#allocation7 + $0x8] sm:$0xff] %v188_v38 }
 0x229   :  { %303 = shalt.err (!%p300_p0)
}
 0x22a   :  { %202 = dma.vmem_to_hbm [thread:$0]  %s197_s9, 256, %s387_s5, [#allocation4], %s319_s21, %s319_s21, %s320_s22  }
 0x22b   :  { %316 = dma.done.wait [#allocation4], 256  }
 0x22c   :  { %317 = vsyncadd [#allocation4], 4294967040 }
 0x22d   :  { %206 = vsyncpa [#allocation3], 1 }
 0x22e   :  { %207 = vsyncpa [#allocation6], 1 }
 0x22f   :  { %208 = vsyncpa [#allocation4], 1 }

</bundles_post_ra>
